<compile_context>
chip_gen: v7x
topology: tpu7x:2x2x1
jax: 0.10.0
libtpu: 0.0.40
codegen_flags: <defaults>
</compile_context>

<pallas_src>
import jax
import jax.numpy as jnp
from jax.experimental import pallas as pl
from jax.experimental.pallas import tpu as pltpu


def _distogram_head_kernel(z_ref, zt_ref, w_ref, b_ref, o_ref):
    # z_ref, zt_ref : (1, TI, TJ, C)   VMEM  (zt = seq-transposed view of z)
    # w_ref         : (C, NB)          VMEM  (pre-scaled by 0.5 when normalize)
    # b_ref         : (1, NB)          VMEM  (pre-scaled: 2b, or b when normalize)
    # o_ref         : (1, TI, TJ, NB)  VMEM
    zs = z_ref[0] + zt_ref[0]                       # (TI, TJ, C), input dtype
    ti, tj, c = zs.shape
    nb = w_ref.shape[1]

    x = zs.reshape(ti * tj, c)                      # collapse leading dims (lane dim untouched)
    logits = jnp.dot(x, w_ref[...], preferred_element_type=jnp.float32)  # MXU, f32 acc
    logits = logits + b_ref[...].astype(jnp.float32)                     # (1, NB) broadcast
    o_ref[0] = logits.reshape(ti, tj, nb).astype(o_ref.dtype)


def _pick_tiles(L, C, NB, itemsize, vmem_budget_bytes):
    """Largest seq-axis tiles whose double-buffered footprint fits the budget."""
    def footprint(ti, tj):
        z_in = 2 * (2 * ti * tj * C * itemsize)     # 2 z inputs x 2 pipeline buffers
        out = 2 * ti * tj * NB * itemsize           # output x 2 pipeline buffers
        return z_in + out

    # Candidates must divide L and keep the block's second-to-last dim a
    # multiple of 8 (sublane rule); a full-extent block (== L) is always legal.
    cands = [t for t in (512, 256, 128, 64, 32, 16, 8) if L % t == 0]
    if not cands:
        cands = [L]

    ti = tj = cands[-1]
    for t in cands:                                  # descending: largest square that fits
        if footprint(t, t) <= vmem_budget_bytes:
            ti = tj = t
            break
    for t in cands:                                  # then try to grow the non-lane (row) dim
        if t > ti and footprint(t, tj) <= vmem_budget_bytes:
            ti = t
            break
    return ti, tj, footprint(ti, tj)


def distogram_head(z, weight, bias, *, normalize=False,
                   vmem_budget_bytes=20 * 1024 * 1024):
    """z: [B, L, L, C_z]; weight: [C_z, num_bins]; bias: [num_bins]."""
    B, L, L2, C = z.shape
    assert L == L2, "pair embedding must be square over the seq axes"
    NB = weight.shape[-1]

    # Fold the "+ transpose" bias doubling and the optional /2 into the params.
    if normalize:
        w_eff = (weight * 0.5).astype(weight.dtype)
        b_eff = bias
    else:
        w_eff = weight
        b_eff = bias * 2.0
    b_eff = b_eff.reshape(1, NB)

    # TODO(synk): see module docstring — transposed operand materialized by XLA
    # because an in-kernel major<->second-minor transpose does not lower.
    z_t = jnp.swapaxes(z, 1, 2)

    itemsize = jnp.dtype(z.dtype).itemsize
    TI, TJ, needed = _pick_tiles(L, C, NB, itemsize, vmem_budget_bytes)
    grid = (B, L // TI, L // TJ)

    flops = 2 * B * L * L * C * NB
    bytes_accessed = (2 * B * L * L * C + B * L * L * NB) * itemsize

    kernel = pl.pallas_call(
        _distogram_head_kernel,
        out_shape=jax.ShapeDtypeStruct((B, L, L, NB), z.dtype),
        grid_spec=pltpu.PrefetchScalarGridSpec(
            num_scalar_prefetch=0,
            grid=grid,
            in_specs=[
                pl.BlockSpec((1, TI, TJ, C), lambda b, i, j: (b, i, j, 0)),   # z
                pl.BlockSpec((1, TI, TJ, C), lambda b, i, j: (b, i, j, 0)),   # z^T (seq)
                pl.BlockSpec((C, NB), lambda b, i, j: (0, 0)),                # weight
                pl.BlockSpec((1, NB), lambda b, i, j: (0, 0)),                # bias
            ],
            out_specs=pl.BlockSpec((1, TI, TJ, NB), lambda b, i, j: (b, i, j, 0)),
        ),
        compiler_params=pltpu.CompilerParams(
            dimension_semantics=("parallel", "parallel", "parallel"),
            vmem_limit_bytes=max(16 << 20, int(needed * 1.5) + (4 << 20)),
        ),
        cost_estimate=pl.CostEstimate(
            flops=flops, transcendentals=0, bytes_accessed=bytes_accessed),
    )
    return kernel(z, z_t, w_eff, b_eff)


def distogram_head_ref(z, weight, bias, *, normalize=False):
    logits = jnp.einsum("blmc,cn->blmn", z, weight) + bias
    logits = logits + jnp.swapaxes(logits, -2, -3)
    if normalize:
        logits = logits / 2
    return logits


if __name__ == "__main__":
    # Small shapes consistent with the module: batch=2, seq_len=8, c_z=32, num_bins=64.
    B, L, C_Z, NUM_BINS = 2, 8, 32, 64

    key = jax.random.PRNGKey(0)
    k_z, k_w, k_b = jax.random.split(key, 3)

    z = jax.random.normal(k_z, (B, L, L, C_Z), dtype=jnp.float32)
    # NOTE: init='final' in the PyTorch module means zero-init; small random
    # params are used instead so the kernel output is non-trivial.
    weight = jax.random.normal(k_w, (C_Z, NUM_BINS), dtype=jnp.float32) * 0.02
    bias = jax.random.normal(k_b, (NUM_BINS,), dtype=jnp.float32) * 0.02

    for normalize in (False, True):
        out = jax.block_until_ready(distogram_head(z, weight, bias, normalize=normalize))
        ref = distogram_head_ref(z, weight, bias, normalize=normalize)
        assert out.shape == (B, L, L, NUM_BINS)
        assert jnp.allclose(out, ref, atol=1e-5, rtol=1e-5), \
            f"mismatch vs. reference (normalize={normalize})"

    print("KERNEL_OK")
</pallas_src>

<mosaic_0001>
module attributes {stable_mosaic.version = 11 : i64} {
  func.func @_distogram_head_kernel(%arg0: i32, %arg1: i32, %arg2: i32, %arg3: memref<1x8x8x32xf32, #tpu.memory_space<vmem>>, %arg4: memref<1x8x8x32xf32, #tpu.memory_space<vmem>>, %arg5: memref<32x64xf32, #tpu.memory_space<vmem>>, %arg6: memref<1x64xf32, #tpu.memory_space<vmem>>, %arg7: memref<1x8x8x64xf32, #tpu.memory_space<vmem>>) attributes {dimension_semantics = [#tpu.dimension_semantics<parallel>, #tpu.dimension_semantics<parallel>, #tpu.dimension_semantics<parallel>], iteration_bounds = array<i64: 2, 1, 1>, scalar_prefetch = 0 : i64, scratch_operands = 0 : i64, tpu.core_type = #tpu.core_type<tc>, window_params = [{transform_indices = @transform_0, window_bounds = array<i64: 1, 8, 8, 32>}, {transform_indices = @transform_1, window_bounds = array<i64: 1, 8, 8, 32>}, {pipeline_mode = #tpu.pipeline_mode<synchronous>, transform_indices = @transform_2, window_bounds = array<i64: 32, 64>}, {pipeline_mode = #tpu.pipeline_mode<synchronous>, transform_indices = @transform_3, window_bounds = array<i64: 1, 64>}, {transform_indices = @transform_4, window_bounds = array<i64: 1, 8, 8, 64>}]} {
    %c0 = arith.constant 0 : index
    %c0_0 = arith.constant 0 : index
    %c0_1 = arith.constant 0 : index
    %c0_2 = arith.constant 0 : index
    %0 = vector.load %arg3[%c0, %c0_0, %c0_1, %c0_2] : memref<1x8x8x32xf32, #tpu.memory_space<vmem>>, vector<1x8x8x32xf32>
    %1 = vector.shape_cast %0 : vector<1x8x8x32xf32> to vector<8x8x32xf32>
    %c0_3 = arith.constant 0 : index
    %c0_4 = arith.constant 0 : index
    %c0_5 = arith.constant 0 : index
    %c0_6 = arith.constant 0 : index
    %2 = vector.load %arg4[%c0_3, %c0_4, %c0_5, %c0_6] : memref<1x8x8x32xf32, #tpu.memory_space<vmem>>, vector<1x8x8x32xf32>
    %3 = vector.shape_cast %2 : vector<1x8x8x32xf32> to vector<8x8x32xf32>
    %4 = arith.addf %1, %3 : vector<8x8x32xf32>
    %5 = vector.shape_cast %4 : vector<8x8x32xf32> to vector<64x32xf32>
    %c0_7 = arith.constant 0 : index
    %c0_8 = arith.constant 0 : index
    %6 = vector.load %arg5[%c0_7, %c0_8] : memref<32x64xf32, #tpu.memory_space<vmem>>, vector<32x64xf32>
    %cst = arith.constant dense<0.000000e+00> : vector<64x64xf32>
    %7 = tpu.matmul %5, %6, %cst {dimension_numbers = #tpu.dot_dimension_numbers<[1], [0], [0], [1], [0, 0, 1, 1], [], []>} : vector<64x32xf32>, vector<32x64xf32>, vector<64x64xf32> -> vector<64x64xf32>
    %c0_9 = arith.constant 0 : index
    %c0_10 = arith.constant 0 : index
    %8 = vector.load %arg6[%c0_9, %c0_10] : memref<1x64xf32, #tpu.memory_space<vmem>>, vector<1x64xf32>
    %9 = vector.broadcast %8 : vector<1x64xf32> to vector<64x64xf32>
    %10 = arith.addf %7, %9 : vector<64x64xf32>
    %11 = vector.shape_cast %10 : vector<64x64xf32> to vector<8x8x64xf32>
    %c0_11 = arith.constant 0 : index
    %c0_12 = arith.constant 0 : index
    %c0_13 = arith.constant 0 : index
    %c0_14 = arith.constant 0 : index
    %12 = vector.load %arg7[%c0_11, %c0_12, %c0_13, %c0_14] : memref<1x8x8x64xf32, #tpu.memory_space<vmem>>, vector<1x8x8x64xf32>
    %13 = vector.shape_cast %12 : vector<1x8x8x64xf32> to vector<8x8x64xf32>
    %14 = vector.shape_cast %11 : vector<8x8x64xf32> to vector<1x8x8x64xf32>
    tpu.vector_store %arg7[%c0_11, %c0_12, %c0_13, %c0_14], %14 {strides = array<i32>} : memref<1x8x8x64xf32, #tpu.memory_space<vmem>>, vector<1x8x8x64xf32>,
    return
  }
  func.func @transform_0(%arg0: i32, %arg1: i32, %arg2: i32) -> (i32, i32, i32, i32) {
    %c0_i32 = arith.constant 0 : i32
    %c0_i32_0 = arith.constant 0 : i32
    return %arg0, %arg1, %arg2, %c0_i32 : i32, i32, i32, i32
  }
  func.func @transform_1(%arg0: i32, %arg1: i32, %arg2: i32) -> (i32, i32, i32, i32) {
    %c0_i32 = arith.constant 0 : i32
    %c0_i32_0 = arith.constant 0 : i32
    return %arg0, %arg1, %arg2, %c0_i32 : i32, i32, i32, i32
  }
  func.func @transform_2(%arg0: i32, %arg1: i32, %arg2: i32) -> (i32, i32) {
    %c0_i32 = arith.constant 0 : i32
    %c0_i32_0 = arith.constant 0 : i32
    %c0_i32_1 = arith.constant 0 : i32
    return %c0_i32, %c0_i32_0 : i32, i32
  }
  func.func @transform_3(%arg0: i32, %arg1: i32, %arg2: i32) -> (i32, i32) {
    %c0_i32 = arith.constant 0 : i32
    %c0_i32_0 = arith.constant 0 : i32
    %c0_i32_1 = arith.constant 0 : i32
    return %c0_i32, %c0_i32_0 : i32, i32
  }
  func.func @transform_4(%arg0: i32, %arg1: i32, %arg2: i32) -> (i32, i32, i32, i32) {
    %c0_i32 = arith.constant 0 : i32
    %c0_i32_0 = arith.constant 0 : i32
    return %arg0, %arg1, %arg2, %c0_i32 : i32, i32, i32, i32
  }
}

</mosaic_0001>

<bundles_post_ra>
// kernel: tpu_custom_call.1
= control target key start
LH: loop header
LB: loop body
LE: loop exit
PB: predicated region body
PF: predicated region fallthrough
CT: control target
= control target key end

     0   :  { %s1311_s0 = inlined_call_operand.hbm [shape: f32[2,8,8,32], index: 0, kind: input, shape index: {}]   ;;  %s1312_s1 = inlined_call_operand.hbm [shape: f32[2,8,8,32], index: 1, kind: input, shape index: {}]   ;;  %s1313_s2 = inlined_call_operand.hbm [shape: f32[32,64], index: 2, kind: input, shape index: {}]   ;;  %s1314_s3 = inlined_call_operand.vmem [shape: f32[1,64], index: 3, kind: input, shape index: {}]   ;;  %s1315_s4 = inlined_call_operand.hbm [shape: f32[2,8,8,64], index: 4, kind: output, shape index: {}]  }
   0x1   :  { %1324 = sst [smem:[#allocation14_spill]] %s1311_s0 }
   0x2   :  { %1325 = sst [smem:[#allocation15_spill]] %s1313_s2 }
   0x3   :  { %9 = vsyncpa [#allocation3], 0 }
   0x4   :  { %11 = vsyncpa [#allocation3 + $0x1], 0 }
   0x5   :  { %12 = vsyncpa [#allocation6], 0 }
   0x6   :  { %14 = vsyncpa [#allocation6 + $0x1], 0 }
   0x7   :  { %15 = vsyncpa [#allocation4], 0 }
   0x8   :  { %17 = vsyncpa [#allocation4 + $0x1], 0  ;;  %s1001_s15 = smov 0   ;;  %s1003_s16 = smov 0  }
   0x9   :  { %s1005_s17 = smov 0   ;;  %s1007_s18 = smov 0  }
   0xa   :  { %s1009_s19 = smov 0   ;;  %s1011_s20 = smov 0  }
   0xb LB: > { %s1032_s21 = sadd.s32 4294967295, %s966_s20   ;;  %s630_s22 = sadd.s32 4294967294, %s966_s20   ;;  %s966_s20 = sphi %s1011_s20, %s23_s20   ;;  %s962_s19 = sphi %s1009_s19, %s1350_s19   ;;  %s958_s18 = sphi %s1007_s18, %s1349_s18   ;;  %s954_s17 = sphi %s1005_s17, %s1348_s17   ;;  %s950_s16 = sphi %s1003_s16, %s1347_s16   ;;  %s946_s15 = sphi %s1001_s15, %s1346_s15  }
   0xc   : > { %p66_p0 = scmp.ne.s32.totalorder %s950_s16, %s946_s15  ;;  %p1316_p1 = scmp.eq.s32.totalorder %s1032_s21, 0 }
   0xd   : > { %p172_p3 = scmp.eq.s32.totalorder %s630_s22, 1  ;;  %p631_p5 = scmp.ge.s32.totalorder %s966_s20, 1 }
   0xe   : > { %p1041_p4 = por %p1316_p1, %p66_p0  ;;  %p179_p7 = scmp.lt.s32.totalorder %s966_s20, 3 }
   0xf   : > { %p1046_p6 = por %p172_p3, %p66_p0  ;;  %s968_s26 = smov [#allocation7]  }
  0x10   : > { %s1326_s23 = scalar_select %p1041_p4, 1, 0 }
  0x11   : > { %s1327_s24 = scalar_select %p1046_p6, 1, 0 }
  0x12   : > { %p1051_p8 = pnand %p631_p5, %p179_p7  ;;  %s191_s27 = sshll.u32 %s968_s26, 4  ;;  %s192_s27 = int_to_ptr.vmem [resolvable:$true] %s191_s27 }
  0x13   : > { %s42_s29 = sadd.s32 1, %s962_s19  ;;  %s1330_s2 = sld [smem:[#allocation15_spill]] }
  0x14   : > { %s1328_s25 = scalar_select %p1051_p8, 1, 0 }
  0x15   : > { %p716_p9 = pneg %p1051_p8 }
  0x17   : > { %p1060_p11 = pnand %p716_p9, %p1316_p1 }
  0x19   : > { %s788_s6 = scalar_lea.hbm %s1330_s2, 512  ;;  %p790_p13 = pneg %p1060_p11 }
  0x1a   : > { %p789_p12 = scmp.ne.s32.totalorder %s1330_s2, %s788_s6  ;;  %p795_p5 = scmp.lt.u32.totalorder %s788_s6, %s1330_s2 }
  0x1c   : > { %p791_p0 = pnand %p790_p13, %p789_p12 }
  0x1e   : > { %p792_p3 = pneg %p791_p0 }
  0x20   : > { %p797_p7 = pnand %p795_p5, %p792_p3 }
  0x22   : > { %800 = shalt.err (!%p797_p7)
}
  0x23   : > { %s801_s11 = scalar_lea.vmem %s192_s27, 512  ;;  %p809_p2 = scmp.lt.s32.totalorder %s192_s27, %s192_s27 }
  0x24   : > { %p802_p9 = scmp.ne.s32.totalorder %s192_s27, %s801_s11  ;;  %p810_p6 = scmp.lt.s32.totalorder %s801_s11, %s801_s11 }
  0x26   : > { %p804_p10 = pnand %p802_p9, %p790_p13  ;;  %p811_p4 = por %p810_p6, %p809_p2 }
  0x28   : > { %p805_p1 = pneg %p804_p10 }
  0x2a   : > { %p812_p8 = pnand %p811_p4, %p805_p1 }
  0x2c   : > { %815 = shalt.err (!%p812_p8)
}
  0x2d   : > { %s1319_s12 = smov 128   ;;  %s1321_s13 = smov 8  }
  0x2e   : > { %719 = dma.hbm_to_vmem [thread:$0]  (!%p1060_p11), %s1330_s2, 512, %s192_s27, [#allocation6], %s1319_s12, %s1319_s12, %s1321_s13  }
  0x2f   : > { %p44_p1 = scmp.ge.s32.totalorder %s42_s29, 2  ;;  %s53_s26 = sadd.s32 1, %s954_s17 }
  0x30   : > { %p60_p2 = scmp.ne.s32.totalorder %s954_s17, %s950_s16  ;;  %p61_p4 = scmp.eq.s32.totalorder %s966_s20, 0 }
  0x31   : > { %s1352_s29 = smov (%p44_p1, %s42_s29), 0  ;;  %p1333_p8 = scmp.eq.s32.totalorder %s1032_s21, 1 }
  0x32   : > { %1331 = sst [smem:[#allocation13_spill]] %s1352_s29  ;;  %p1090_p6 = por %p61_p4, %p60_p2 }
  0x33   : > { %p1096_p10 = por %p1333_p8, %p60_p2  ;;  %s46_s5 = ssub.s32 %s962_s19, %s1352_s29 }
  0x34   : > { %p732_p12 = scmp.lt.s32.totalorder %s966_s20, 2  ;;  %p51_p11 = scmp.eq.s32.totalorder %s46_s5, 0 }
  0x35   : > { %s208_s27 = sand.u32 1, %s954_s17   ;;  %s659_s8 = sshll.u32 %s962_s19, 10 }
  0x36   : > { %s634_s6 = sshll.u32 %s208_s27, 6  ;;  %s1335_s0 = sld [smem:[#allocation14_spill]] }
  0x37   : > { %s1105_s7 = scalar_select %p51_p11, %s954_s17, %s53_s26  }
  0x38   : > { %s212_s14 = scalar_lea.vmem [#allocation2], %s634_s6  ;;  %p1117_p13 = pnand %p732_p12, %p1090_p6 }
  0x39   : > { %s222_s22 = sshll.u32 %s212_s14, 4  ;;  %s1124_s9 = scalar_lea.hbm %s1312_s1, %s659_s8  ;;  %s1113_s22 = int_to_ptr.vmem [resolvable:$true] %s222_s22 }
  0x3a   : > { %s236_s10 = scalar_lea.vmem [#allocation5], %s634_s6  ;;  %s1128_s2 = scalar_lea.sflag [#allocation3], %s208_s27 }
  0x3b   : > { %s1126_s13 = sshll.u32 %s236_s10, 4  ;;  %p818_p3 = pneg %p1117_p13  ;;  %s1160_s13 = int_to_ptr.vmem [resolvable:$true] %s1126_s13 }
  0x3c   : > { %s1111_s11 = scalar_lea.hbm %s1335_s0, %s659_s8  ;;  %s821_s12 = scalar_lea.hbm %s1335_s0, 2048 }
  0x3d   : > { %s816_s14 = scalar_lea.hbm %s1111_s11, 1024  ;;  %p822_p9 = scmp.lt.u32.totalorder %s1111_s11, %s1335_s0 }
  0x3e   : > { %p817_p0 = scmp.ne.s32.totalorder %s1111_s11, %s816_s14  ;;  %p823_p1 = scmp.lt.u32.totalorder %s821_s12, %s816_s14 }
  0x3f   : > { %p825_p4 = scmp.lt.u32.totalorder %s816_s14, %s1111_s11 }
  0x40   : > { %p819_p5 = pnand %p818_p3, %p817_p0  ;;  %p824_p2 = por %p823_p1, %p822_p9 }
  0x42   : > { %p820_p7 = pneg %p819_p5  ;;  %p826_p6 = por %p825_p4, %p824_p2 }
  0x44   : > { %p827_p8 = pnand %p826_p6, %p820_p7 }
  0x46   : > { %830 = shalt.err (!%p827_p8)
}
  0x47   : > { %s831_s27 = scalar_lea.vmem %s1113_s22, 1024  ;;  %s971_s29 = smov [#allocation2]  }
  0x48   : > { %p832_p12 = scmp.ne.s32.totalorder %s1113_s22, %s831_s27  ;;  %s836_s6 = sshll.u32 %s971_s29, 4  ;;  %s837_s6 = int_to_ptr.vmem [resolvable:$false] %s836_s6 }
  0x49   : > { %s838_s10 = scalar_lea.vmem %s837_s6, 2048  ;;  %p839_p5 = scmp.lt.s32.totalorder %s1113_s22, %s837_s6 }
  0x4a   : > { %p834_p11 = pnand %p832_p12, %p818_p3  ;;  %p840_p9 = scmp.lt.s32.totalorder %s838_s10, %s831_s27 }
  0x4c   : > { %p835_p0 = pneg %p834_p11  ;;  %p841_p1 = por %p840_p9, %p839_p5 }
  0x4e   : > { %p842_p2 = pnand %p841_p1, %p835_p0 }
  0x50   : > { %845 = shalt.err (!%p842_p2)
}
  0x51   : > { %s1337_s14 = smov 8   ;;  %s1338_s30 = smov 128  }
  0x52   : > { %723 = dma.hbm_to_vmem [thread:$0]  (!%p1117_p13), %s1111_s11, 1024, %s1113_s22, %s1128_s2, %s1338_s30, %s1338_s30, %s1337_s14  }
  0x53   : > { %s232_s12 = sand.u32 1, %s966_s20   ;;  %s846_s8 = scalar_lea.hbm %s1124_s9, 1024 }
  0x54   : > { %s1163_s26 = scalar_lea.sflag [#allocation6], %s232_s12  ;;  %p847_p7 = scmp.ne.s32.totalorder %s1124_s9, %s846_s8 }
  0x55   : > { %s851_s6 = scalar_lea.hbm %s1312_s1, 2048  ;;  %p852_p8 = scmp.lt.u32.totalorder %s1124_s9, %s1312_s1 }
  0x56   : > { %p849_p4 = pnand %p847_p7, %p818_p3  ;;  %p853_p12 = scmp.lt.u32.totalorder %s851_s6, %s846_s8 }
  0x57   : > { %p855_p0 = scmp.lt.u32.totalorder %s846_s8, %s1124_s9 }
  0x58   : > { %p850_p6 = pneg %p849_p4  ;;  %p854_p11 = por %p853_p12, %p852_p8 }
  0x5a   : > { %p856_p5 = por %p855_p0, %p854_p11 }
  0x5c   : > { %p857_p9 = pnand %p856_p5, %p850_p6 }
  0x5e   : > { %860 = shalt.err (!%p857_p9)
}
  0x5f   : > { %s861_s2 = scalar_lea.vmem %s1160_s13, 1024  ;;  %s972_s11 = smov [#allocation5]  }
  0x60   : > { %p862_p1 = scmp.ne.s32.totalorder %s1160_s13, %s861_s2  ;;  %s866_s22 = sshll.u32 %s972_s11, 4  ;;  %s867_s22 = int_to_ptr.vmem [resolvable:$false] %s866_s22 }
  0x61   : > { %s868_s0 = scalar_lea.vmem %s867_s22, 2048  ;;  %p869_p4 = scmp.lt.s32.totalorder %s1160_s13, %s867_s22 }
  0x62   : > { %p864_p2 = pnand %p862_p1, %p818_p3  ;;  %p870_p8 = scmp.lt.s32.totalorder %s868_s0, %s861_s2 }
  0x64   : > { %p865_p7 = pneg %p864_p2  ;;  %p871_p12 = por %p870_p8, %p869_p4 }
  0x66   : > { %p872_p11 = pnand %p871_p12, %p865_p7 }
  0x68   : > { %875 = shalt.err (!%p872_p11)
}
  0x69   : > { %726 = dma.hbm_to_vmem [thread:$0]  (!%p1117_p13), %s1124_s9, 1024, %s1160_s13, %s1163_s26, %s1338_s30, %s1338_s30, %s1337_s14  }
  0x6a   : > { %p1339_p3 = scmp.ne.s32.totalorder %s1328_s25, 0 }
  0x6b   : > { %s1195_s12 = sand.u32 (!%p1339_p3), 1, %s950_s16   ;;  %p1340_p6 = scmp.ne.s32.totalorder (!%p1339_p3), %s1326_s23, 0 }
  0x6c   : > { %258 = sbr.rel (%p1339_p3) target bundleno = 367 (0x16f), region = 36  ;;  %s1198_s8 = sshll.u32 (!%p1339_p3), %s1195_s12, 6 }
  0x6d   : > { %s261_s5 = scalar_lea.sflag (!%p1339_p3), [#allocation3], %s1195_s12  ;;  %s1202_s27 = scalar_lea.vmem (!%p1339_p3), [#allocation2], %s1198_s8 }
  0x73   : > { %929 = dma.done.wait (%p1340_p6), %s261_s5, 1024  }
  0x74   : > { %931 = vsyncadd (%p1340_p6), %s261_s5, 4294966272  ;;  %s269_s25 = sand.u32 1, %s1032_s21   ;;  %s1210_s9 = scalar_lea.vmem [#allocation5], %s1198_s8 }
  0x75   : > { %s270_s13 = scalar_lea.sflag [#allocation6], %s269_s25 }
  0x76   : > { %933 = dma.done.wait (%p1340_p6), %s270_s13, 1024  }
  0x77   : > { %935 = vsyncadd (%p1340_p6), %s270_s13, 4294966272  ;;  %p1341_p13 = scmp.eq.s32.totalorder %s1032_s21, 0 }
  0x79   : > { %937 = dma.done.wait (%p1341_p13), [#allocation6], 512   ;;  %p1342_p0 = pmov %p1341_p13 }
  0x7a   : > { %v334_v0 = vld [vmem:[#allocation7] sm:$0xff]  ;;  %v335_v1 = vld [vmem:[#allocation7 + $0x8] sm:$0xff]  ;;  %v336_v2 = vld [vmem:[#allocation7 + $0x10] sm:$0xff]  ;;  %vm345_vm0 = vcmask 261120   ;;  %vm475_vm1 = vcmask 523264   ;;  %s661_s14 = sshll.u32 %s958_s18, 10 }
  0x7b   : > { %939 = vsyncadd (%p1342_p0), [#allocation6], 4294966784  ;;  %v694_v3 = vpack.c.bf16 %v335_v1, %v334_v0  ;;  %v337_v4 = vld [vmem:[#allocation7 + $0x18] sm:$0xff]  ;;  %v310_v5 = vld [vmem:[%s1202_s27] sm:$0xff]  ;;  %s306_s30 = scalar_lea.vmem [#allocation8], %s1198_s8  ;;  %s1256_s6 = scalar_lea.hbm %s1315_s4, %s661_s14 }
  0x7c   : > { %v318_v6 = vld [vmem:[%s1210_s9] sm:$0xff]  ;;  %v698_v7 = vpack.c.bf16 %v337_v4, %v336_v2  ;;  %v311_v12 = vld [vmem:[%s1202_s27 + $0x8] sm:$0xff]  ;;  %v312_v16 = vld [vmem:[%s1202_s27 + $0x10] sm:$0xff]  ;;  %s501_s26 = sshll.u32 %s306_s30, 4  ;;  %s485_s10 = scalar_lea.sflag [#allocation4], %s1195_s12  ;;  %s1258_s26 = int_to_ptr.vmem [resolvable:$true] %s501_s26 }
  0x7d   : > { %v326_v8 = vadd.f32 %v318_v6, %v310_v5  ;;  %v314_v9 = vld [vmem:[%s1202_s27 + $0x20] sm:$0xff]  ;;  %695 = vmatprep.subr.bf16.mxu0 %v694_v3  ;;  %702 = vmatprep.subr.bf16.mxu1 %v694_v3  ;;  %v319_v13 = vld [vmem:[%s1210_s9 + $0x8] sm:$0xff]  ;;  %v320_v17 = vld [vmem:[%s1210_s9 + $0x10] sm:$0xff]  ;;  %s876_s2 = scalar_lea.vmem %s1258_s26, 1024  ;;  %s973_s11 = smov [#allocation8]  }
  0x7e   : > { %v322_v10 = vld [vmem:[%s1210_s9 + $0x20] sm:$0xff]  ;;  %697 = vmatpush3.bf16.msra.mxu0 %v694_v3  ;;  %704 = vmatpush3.bf16.msra.mxu1 %v694_v3  ;;  %v315_v14 = vld [vmem:[%s1202_s27 + $0x28] sm:$0xff]  ;;  %v316_v18 = vld [vmem:[%s1202_s27 + $0x30] sm:$0xff]  ;;  %v327_v20 = vadd.f32 %v319_v13, %v311_v12  ;;  %v328_v23 = vadd.f32 %v320_v17, %v312_v16  ;;  %p877_p5 = scmp.ne.s32.totalorder %s1258_s26, %s876_s2  ;;  %s880_s22 = sshll.u32 %s973_s11, 4  ;;  %s881_s22 = int_to_ptr.vmem [resolvable:$false] %s880_s22 }
  0x7f   : > { %v330_v11 = vadd.f32 %v322_v10, %v314_v9  ;;  %v323_v15 = vld [vmem:[%s1210_s9 + $0x28] sm:$0xff]  ;;  %699 = vmatprep.subr.bf16.mxu0 %v698_v7  ;;  %703 = vmatprep.subr.bf16.mxu1 %v698_v7  ;;  %v324_v19 = vld [vmem:[%s1210_s9 + $0x30] sm:$0xff]  ;;  %v313_v22 = vld [vmem:[%s1202_s27 + $0x18] sm:$0xff]  ;;  %s882_s0 = scalar_lea.vmem %s881_s22, 2048  ;;  %p883_p2 = scmp.lt.s32.totalorder %s1258_s26, %s881_s22 }
  0x80   : > { %682 = vmatprep.mubr.msk.f32.mxu0 %vm345_vm0, %v326_v8  ;;  %v331_v21 = vadd.f32 %v323_v15, %v315_v14  ;;  %v332_v24 = vadd.f32 %v324_v19, %v316_v18  ;;  %v321_v25 = vld [vmem:[%s1210_s9 + $0x18] sm:$0xff]  ;;  %v645_v30 = vld [vmem:[%s1314_s3] ss:$0 sm:$0xff]  ;;  %p878_p9 = pnand %p877_p5, %p1096_p10  ;;  %p884_p7 = scmp.lt.s32.totalorder %s882_s0, %s876_s2 }
  0x81   : > { %688 = vmatprep.mubr.msk.f32.mxu1 %vm345_vm0, %v330_v11  ;;  %v317_v26 = vld [vmem:[%s1202_s27 + $0x38] sm:$0xff]  ;;  %v329_v28 = vadd.f32 %v321_v25, %v313_v22 }
  0x82   : > { %701 = vmatpush3.bf16.msra.mxu0 %v698_v7  ;;  %705 = vmatpush3.bf16.msra.mxu1 %v698_v7  ;;  %v325_v27 = vld [vmem:[%s1210_s9 + $0x38] sm:$0xff]  ;;  %p879_p1 = pneg %p878_p9  ;;  %p885_p4 = por %p884_p7, %p883_p2 }
  0x83   : > { %v333_v29 = vadd.f32 %v325_v27, %v317_v26 }
  0x84   : > { %p886_p8 = pnand %p885_p4, %p879_p1 }
  0x85   : > { %683 = vmatmul.mubr.msk.f32.vlgmr.msra.gmra.mrb[0].mxu0 %vm345_vm0, %v327_v20  ;;  %689 = vmatmul.mubr.msk.f32.vlgmr.msra.gmra.mrb[0].mxu1 %vm345_vm0, %v331_v21 }
  0x86   : > { %685 = vmatprep.mubr.msk.f32.mxu0 %vm345_vm0, %v328_v23  ;;  %691 = vmatprep.mubr.msk.f32.mxu1 %vm345_vm0, %v332_v24 }
  0x89   : > { %686 = vmatmul.mubr.msk.f32.gmra.mrb[2].mxu0 %vm345_vm0, %v329_v28  ;;  %692 = vmatmul.mubr.msk.f32.gmra.mrb[2].mxu1 %vm345_vm0, %v333_v29 }
 0x158   : > { %v684_v31 = vpop.f32.mrb[0].mxu0  ;;  %v690_v32 = vpop.f32.mrb[0].mxu1 }
 0x159   : > { %v442_v33 = vadd.f32 %v684_v31, %v645_v30  ;;  %v462_v34 = vadd.f32 %v690_v32, %v645_v30  ;;  %v436_v35 = vpop.f32.mrb[1].mxu0  ;;  %v456_v36 = vpop.f32.mrb[1].mxu1 }
 0x15a   : > { %v437_v37 = vadd.f32 %v645_v30, %v436_v35  ;;  %v457_v38 = vadd.f32 %v645_v30, %v456_v36 }
 0x15b   : > { %477 = vst.msk [vmem:[%s306_s30 + $0x8] sm:$0xff] %vm475_vm1, %v442_v33  ;;  %481 = vst.msk [vmem:[%s306_s30 + $0x28] sm:$0xff] %vm475_vm1, %v462_v34 }
 0x15c   : > { %476 = vst.msk [vmem:[%s306_s30] sm:$0xff] %vm475_vm1, %v437_v37  ;;  %480 = vst.msk [vmem:[%s306_s30 + $0x20] sm:$0xff] %vm475_vm1, %v457_v38  ;;  %v687_v39 = vpop.f32.mrb[2].mxu0  ;;  %v693_v40 = vpop.f32.mrb[2].mxu1 }
 0x15d   : > { %v452_v41 = vadd.f32 %v687_v39, %v645_v30  ;;  %v472_v42 = vadd.f32 %v693_v40, %v645_v30  ;;  %v446_v43 = vpop.f32.mrb[3].mxu0  ;;  %v466_v44 = vpop.f32.mrb[3].mxu1 }
 0x15e   : > { %v447_v45 = vadd.f32 %v645_v30, %v446_v43  ;;  %v467_v46 = vadd.f32 %v645_v30, %v466_v44 }
 0x15f   : > { %479 = vst.msk [vmem:[%s306_s30 + $0x18] sm:$0xff] %vm475_vm1, %v452_v41  ;;  %483 = vst.msk [vmem:[%s306_s30 + $0x38] sm:$0xff] %vm475_vm1, %v472_v42 }
 0x160   : > { %478 = vst.msk [vmem:[%s306_s30 + $0x10] sm:$0xff] %vm475_vm1, %v447_v45  ;;  %482 = vst.msk [vmem:[%s306_s30 + $0x30] sm:$0xff] %vm475_vm1, %v467_v46 }
 0x161   : > { %889 = shalt.err (!%p886_p8)
}
 0x162   : > { %s890_s8 = scalar_lea.hbm %s1256_s6, 1024  ;;  %s894_s25 = scalar_lea.hbm %s1315_s4, 2048 }
 0x163   : > { %p891_p12 = scmp.ne.s32.totalorder %s1256_s6, %s890_s8  ;;  %p895_p6 = scmp.lt.u32.totalorder %s1256_s6, %s1315_s4 }
 0x164   : > { %p896_p13 = scmp.lt.u32.totalorder %s894_s25, %s890_s8  ;;  %p898_p5 = scmp.lt.u32.totalorder %s890_s8, %s1256_s6 }
 0x165   : > { %p892_p11 = pnand %p891_p12, %p1096_p10 }
 0x166   : > { %p897_p0 = por %p896_p13, %p895_p6 }
 0x167   : > { %p893_p3 = pneg %p892_p11 }
 0x168   : > { %p899_p9 = por %p898_p5, %p897_p0 }
 0x16a   : > { %p900_p1 = pnand %p899_p9, %p893_p3 }
 0x16c   : > { %903 = shalt.err (!%p900_p1)
}
 0x16d   : > { %s974_s21 = smov 128   ;;  %s975_s23 = smov 8  }
 0x16e   : > { %714 = dma.vmem_to_hbm [thread:$0]  (%p1096_p10), %s1258_s26, 1024, %s1256_s6, %s485_s10, %s974_s21, %s974_s21, %s975_s23  }
 0x16f PF: > { %s516_s14 = sand.u32 1, %s946_s15   ;;  %p1343_p2 = scmp.ne.s32.totalorder %s1327_s24, 0 }
 0x170   : > { %p1344_p7 = scmp.ge.s32.totalorder %s966_s20, 2  ;;  %s517_s30 = scalar_lea.sflag [#allocation4], %s516_s14 }
 0x172   : > { %p728_p4 = pnand %p1344_p7, %p1343_p2 }
 0x174   : > { %941 = dma.done.wait (!%p728_p4), %s517_s30, 1024  }
 0x175   : > { %943 = vsyncadd (!%p728_p4), %s517_s30, 4294966272  ;;  %s23_s20 = sadd.s32 1, %s966_s20   ;;  %s1345_s28 = sld [smem:[#allocation13_spill]] }
 0x176   : > { %p20_p8 = scmp.ge.s32.totalorder %s23_s20, 4   ;;  %s1346_s15 = smov %s950_s16 }
 0x177   : > { %s1347_s16 = smov %s954_s17  ;;  %s1348_s17 = smov %s1105_s7 }
 0x178   : > { %s1349_s18 = smov %s962_s19  ;;  %22 = sbr.rel (!%p20_p8) target bundleno = 11 (0xb), region = 98 }
 0x17b   : > { %s1350_s19 = smov %s1345_s28 }
 0x17f   :  { %522 = vsyncpa [#allocation3], 1 }
 0x180   :  { %524 = vsyncpa [#allocation3 + $0x1], 1 }
 0x181   :  { %525 = vsyncpa [#allocation6], 1 }
 0x182   :  { %527 = vsyncpa [#allocation6 + $0x1], 1 }
 0x183   :  { %528 = vsyncpa [#allocation4], 1 }
 0x184   :  { %530 = vsyncpa [#allocation4 + $0x1], 1 }

</bundles_post_ra>
